<compile_context>
chip_gen: v6e
topology: v6e:2x2x1
jax: 0.10.0
libtpu: 0.0.40
codegen_flags: <defaults>
</compile_context>

<pallas_src>
import math

import jax
import jax.numpy as jnp
from jax.experimental import pallas as pl
from jax.experimental.pallas import tpu as pltpu

KERNEL_SIZE = 17
SIGMA = 3.0
LOSS_WEIGHT = 1.0


# ----------------------------------------------------------------------- helpers
def _gaussian_kernel1d(kernel_size, sigma):
    # matches torchvision._get_gaussian_kernel1d
    half = (kernel_size - 1) * 0.5
    x = jnp.linspace(-half, half, kernel_size, dtype=jnp.float32)
    pdf = jnp.exp(-0.5 * (x / sigma) ** 2)
    return pdf / jnp.sum(pdf)


def _blur_matrix(size, kernel_size, sigma):
    """(size, size) f32 matrix A with A @ x == gaussian blur of x along its leading
    axis under torch-style 'reflect' padding.  Built with exact f32 scatter-adds."""
    pad = kernel_size // 2
    if size <= pad:
        raise ValueError(
            f"reflect padding needs spatial size > kernel_size//2 ({pad}); got {size}")
    g = _gaussian_kernel1d(kernel_size, sigma)
    rows = jnp.arange(size)
    A = jnp.zeros((size, size), jnp.float32)
    for k in range(kernel_size):                 # static Python loop over the K taps
        src = rows + k - pad                     # padded position -> reflect source
        src = jnp.where(src < 0, -src, src)
        src = jnp.where(src > size - 1, 2 * (size - 1) - src, src)
        A = A.at[rows, src].add(g[k])
    return A


def _device_kind():
    try:
        return jax.devices()[0].device_kind.lower()
    except Exception:
        return ""


def _cw_target():
    # MXU-native free dim: 128 on v5e, 256 on v6e/v7x.
    kind = _device_kind()
    if "v5 lite" in kind or "v5lite" in kind or "v5e" in kind:
        return 128
    return 256


def _physical_vmem_bytes():
    try:
        return int(pltpu.get_tpu_info().vmem_capacity_bytes)
    except Exception:
        return 64 * 1024 * 1024 if "v7" in _device_kind() else 128 * 1024 * 1024


def _vmem_limit(block_bytes):
    want = int(block_bytes * 3 // 2) + (4 << 20)       # block footprint + headroom
    return max(16 << 20, min(want, (_physical_vmem_bytes() * 3) // 4))


def _choose_cblk(NC, W, cw_target):
    """Channel batch so that cblk*W is a multiple of 128, grown toward the MXU-native
    lane target while keeping >= 2 parallel grid steps when possible (v7x: 2 TCs)."""
    c = 128 // math.gcd(W, 128)                        # minimum for lane alignment
    while c * W < cw_target and -(-NC // (2 * c)) >= 2:
        c *= 2
    return c


# ----------------------------------------------------------------------- kernels
def _smooth_kernel(ah_ref, awb_ref, x_ref, out_ref):
    x = x_ref[...].astype(jnp.float32)                                      # (H, CW) f32
    xb = x_ref[...].astype(jnp.bfloat16)                                    # bf16 MXU copy
    tmp = jnp.dot(ah_ref[...], xb, preferred_element_type=jnp.float32)      # H-blur
    blur = jnp.dot(tmp.astype(jnp.bfloat16), awb_ref[...],
                   preferred_element_type=jnp.float32)                      # W-blur
    out_ref[...] = jnp.sum(jnp.abs(x - blur), axis=0, keepdims=True)        # (1, CW)


def _smooth_kernel_weighted(ah_ref, awb_ref, x_ref, w_ref, out_ref):
    x = x_ref[...].astype(jnp.float32)
    xb = x_ref[...].astype(jnp.bfloat16)
    tmp = jnp.dot(ah_ref[...], xb, preferred_element_type=jnp.float32)
    blur = jnp.dot(tmp.astype(jnp.bfloat16), awb_ref[...],
                   preferred_element_type=jnp.float32)
    d = jnp.abs(x - blur) * w_ref[...].astype(jnp.float32)
    out_ref[...] = jnp.sum(d, axis=0, keepdims=True)


# ----------------------------------------------------------------------- wrapper
def smooth_loss(pred, weight=None, avg_factor=None,
                kernel_size=KERNEL_SIZE, sigma=SIGMA, loss_weight=LOSS_WEIGHT):
    """target = gaussian_blur(pred); mean-reduced weighted L1(pred, target) * loss_weight."""
    N, C, H, W = pred.shape
    NC = N * C
    itm_x = jnp.dtype(pred.dtype).itemsize
    itm_w = jnp.dtype(weight.dtype).itemsize if weight is not None else 0

    A_h = _blur_matrix(H, kernel_size, sigma).astype(jnp.bfloat16)    # (H,H) left-multiply
    A_w = _blur_matrix(W, kernel_size, sigma).T                       # (W,W) right-multiply (f32)

    natural = (W % 128 == 0)
    if natural:
        # pred is already lane-dense: no slab transpose, no kron, grid over channels.
        cblk, nb, NCp, CW = 1, NC, NC, W
        A_wb = A_w.astype(jnp.bfloat16)
        x_in = pred.reshape(NC, H, W)
        w_in = None if weight is None else weight.reshape(NC, H, W)
        x_spec = pl.BlockSpec((pl.Squeezed(), H, W), lambda i: (i, 0, 0))
        out_spec = pl.BlockSpec((pl.Squeezed(), 1, W), lambda i: (i, 0, 0))
        out_shape = jax.ShapeDtypeStruct((NC, 1, W), jnp.float32)
    else:
        # TODO(synk): for W with tiny gcd(W,128) (e.g. W=300) the minimum cblk blows up
        # the kron; a zero-padded-W variant with a (Wp,Wp) blur matrix would be better.
        cblk = _choose_cblk(NC, W, _cw_target())
        nb = -(-NC // cblk)                   # channel blocks (grid size)
        NCp = nb * cblk                       # channels padded with zero channels
        CW = cblk * W                         # lane width per block (multiple of 128)
        A_wb = jnp.kron(jnp.eye(cblk, dtype=jnp.float32), A_w).astype(jnp.bfloat16)

        def to_slab(a):
            a = a.reshape(NC, H, W)
            if NCp > NC:                      # zero channels contribute 0 to the sum
                a = jnp.concatenate([a, jnp.zeros((NCp - NC, H, W), a.dtype)], axis=0)
            # (H, NCp*W): lane axis packs (channel, W) — layout plumbing only.
            return jnp.transpose(a, (1, 0, 2)).reshape(H, NCp * W)

        x_in = to_slab(pred)
        w_in = None if weight is None else to_slab(weight)
        x_spec = pl.BlockSpec((H, CW), lambda i: (0, i))
        out_spec = pl.BlockSpec((1, CW), lambda i: (0, i))
        out_shape = jax.ShapeDtypeStruct((1, NCp * W), jnp.float32)

    # cost / VMEM bookkeeping
    flops = 2 * nb * (H * H * CW + H * CW * CW) + 4 * nb * H * CW
    bytes_accessed = (x_in.size * itm_x + (w_in.size * itm_w if w_in is not None else 0)
                      + A_h.size * 2 + A_wb.size * 2 + NCp * W * 4)
    cost = pl.CostEstimate(flops=int(flops), transcendentals=0,
                           bytes_accessed=int(bytes_accessed))
    block_bytes = (2 * H * CW * itm_x + 2 * H * CW * itm_w       # double-buffered streams
                   + A_h.size * 2 + A_wb.size * 2                # single-buffered constants
                   + 2 * CW * 4                                  # output partials
                   + 4 * H * CW * 4)                             # in-kernel f32/bf16 temps
    vmem_limit = _vmem_limit(block_bytes)

    # TODO(synk): for very large H, additionally tile the H axis using the bandedness of
    # A_h (17-tap kernel => 8-row halo) to stay within v7x's 64 MiB VMEM.

    def run(single_buffer_consts):
        def const_spec(shape):
            idx = lambda i: (0,) * len(shape)
            if single_buffer_consts:
                return pl.BlockSpec(shape, idx, pipeline_mode=pl.Buffered(1))
            return pl.BlockSpec(shape, idx)

        in_specs = [const_spec(A_h.shape), const_spec(A_wb.shape), x_spec]
        args = [A_h, A_wb, x_in]
        kern = _smooth_kernel
        if w_in is not None:
            in_specs.append(x_spec)
            args.append(w_in)
            kern = _smooth_kernel_weighted

        return pl.pallas_call(
            kern,
            out_shape=out_shape,
            grid_spec=pltpu.PrefetchScalarGridSpec(
                num_scalar_prefetch=0,
                grid=(nb,),
                in_specs=in_specs,
                out_specs=out_spec,                      # disjoint lane-dense partials
            ),
            compiler_params=pltpu.CompilerParams(
                dimension_semantics=("parallel",),       # channel blocks are independent
                vmem_limit_bytes=int(vmem_limit),
            ),
            cost_estimate=cost,
        )(*args)

    try:
        partial = run(single_buffer_consts=True)
    except Exception:
        # TODO(synk): JAX versions without BlockSpec.pipeline_mode / Buffered(1) support.
        partial = run(single_buffer_consts=False)

    total = jnp.sum(partial)
    denom = jnp.float32(N * C * H * W) if avg_factor is None else jnp.float32(avg_factor)
    return total / denom * loss_weight


# ----------------------------------------------------------------------- reference
def smooth_loss_ref(pred, weight=None, avg_factor=None,
                    kernel_size=KERNEL_SIZE, sigma=SIGMA, loss_weight=LOSS_WEIGHT):
    # pure-JAX f32 reference (separable shift-and-sum convolution)
    N, C, H, W = pred.shape
    pad = kernel_size // 2
    g = _gaussian_kernel1d(kernel_size, sigma)
    x = pred.astype(jnp.float32)
    padded = jnp.pad(x, ((0, 0), (0, 0), (pad, pad), (pad, pad)), mode="reflect")
    tmp = sum(g[k] * padded[:, :, k:k + H, :] for k in range(kernel_size))
    blur = sum(g[k] * tmp[:, :, :, k:k + W] for k in range(kernel_size))
    loss = jnp.abs(x - blur)
    if weight is not None:
        loss = loss * weight.astype(jnp.float32)
    if avg_factor is None:
        return loss.mean() * loss_weight
    return loss.sum() / avg_factor * loss_weight


if __name__ == "__main__":
    key = jax.random.PRNGKey(0)
    k1, k2, k3 = jax.random.split(key, 3)
    pred = jax.random.normal(k1, (2, 4, 16, 16), dtype=jnp.float32)
    weight = jax.random.uniform(k2, (2, 4, 16, 16), dtype=jnp.float32)

    # default path: weight=None, avg_factor=None  (slab layout, W not lane-aligned)
    out = jax.block_until_ready(smooth_loss(pred))
    ref = smooth_loss_ref(pred)
    assert jnp.allclose(out, ref, rtol=1e-2, atol=1e-4), (out, ref)

    # weighted path with explicit avg_factor
    out_w = jax.block_until_ready(smooth_loss(pred, weight=weight, avg_factor=100.0))
    ref_w = smooth_loss_ref(pred, weight=weight, avg_factor=100.0)
    assert jnp.allclose(out_w, ref_w, rtol=1e-2, atol=1e-4), (out_w, ref_w)

    # lane-aligned W: natural (NC, H, W) layout path (no slab transpose, no kron)
    pred2 = jax.random.normal(k3, (1, 2, 16, 128), dtype=jnp.float32)
    out2 = jax.block_until_ready(smooth_loss(pred2))
    ref2 = smooth_loss_ref(pred2)
    assert jnp.allclose(out2, ref2, rtol=1e-2, atol=1e-4), (out2, ref2)

    print("KERNEL_OK")
</pallas_src>

<mosaic_0001>
module attributes {stable_mosaic.version = 11 : i64} {
  func.func @_smooth_kernel(%arg0: i32, %arg1: memref<16x16xbf16, #tpu.memory_space<vmem>>, %arg2: memref<128x128xbf16, #tpu.memory_space<vmem>>, %arg3: memref<16x128xf32, #tpu.memory_space<vmem>>, %arg4: memref<1x128xf32, #tpu.memory_space<vmem>>) attributes {dimension_semantics = [#tpu.dimension_semantics<parallel>], iteration_bounds = array<i64: 1>, scalar_prefetch = 0 : i64, scratch_operands = 0 : i64, tpu.core_type = #tpu.core_type<tc>, window_params = [{pipeline_mode = #tpu.pipeline_mode<synchronous>, transform_indices = @transform_0, window_bounds = array<i64: 16, 16>}, {pipeline_mode = #tpu.pipeline_mode<synchronous>, transform_indices = @transform_1, window_bounds = array<i64: 128, 128>}, {transform_indices = @transform_2, window_bounds = array<i64: 16, 128>}, {transform_indices = @transform_3, window_bounds = array<i64: 1, 128>}]} {
    %c0 = arith.constant 0 : index
    %c0_0 = arith.constant 0 : index
    %0 = vector.load %arg3[%c0, %c0_0] : memref<16x128xf32, #tpu.memory_space<vmem>>, vector<16x128xf32>
    %c0_1 = arith.constant 0 : index
    %c0_2 = arith.constant 0 : index
    %1 = vector.load %arg3[%c0_1, %c0_2] : memref<16x128xf32, #tpu.memory_space<vmem>>, vector<16x128xf32>
    %2 = arith.truncf %1 : vector<16x128xf32> to vector<16x128xbf16>
    %c0_3 = arith.constant 0 : index
    %c0_4 = arith.constant 0 : index
    %3 = vector.load %arg1[%c0_3, %c0_4] : memref<16x16xbf16, #tpu.memory_space<vmem>>, vector<16x16xbf16>
    %cst = arith.constant dense<0.000000e+00> : vector<16x128xf32>
    %4 = tpu.matmul %3, %2, %cst {dimension_numbers = #tpu.dot_dimension_numbers<[1], [0], [0], [1], [0, 0, 1, 1], [], []>} : vector<16x16xbf16>, vector<16x128xbf16>, vector<16x128xf32> -> vector<16x128xf32>
    %5 = arith.truncf %4 : vector<16x128xf32> to vector<16x128xbf16>
    %c0_5 = arith.constant 0 : index
    %c0_6 = arith.constant 0 : index
    %6 = vector.load %arg2[%c0_5, %c0_6] : memref<128x128xbf16, #tpu.memory_space<vmem>>, vector<128x128xbf16>
    %cst_7 = arith.constant dense<0.000000e+00> : vector<16x128xf32>
    %7 = tpu.matmul %5, %6, %cst_7 {dimension_numbers = #tpu.dot_dimension_numbers<[1], [0], [0], [1], [0, 0, 1, 1], [], []>} : vector<16x128xbf16>, vector<128x128xbf16>, vector<16x128xf32> -> vector<16x128xf32>
    %8 = arith.subf %0, %7 : vector<16x128xf32>
    %9 = math.absf %8 : vector<16x128xf32>
    %cst_8 = arith.constant dense<0.000000e+00> : vector<128xf32>
    %10 = vector.multi_reduction <add>, %9, %cst_8 [0] : vector<16x128xf32> to vector<128xf32>
    %11 = vector.shape_cast %10 : vector<128xf32> to vector<1x128xf32>
    %c0_9 = arith.constant 0 : index
    %c0_10 = arith.constant 0 : index
    %12 = vector.load %arg4[%c0_9, %c0_10] : memref<1x128xf32, #tpu.memory_space<vmem>>, vector<1x128xf32>
    tpu.vector_store %arg4[%c0_9, %c0_10], %11 {strides = array<i32>} : memref<1x128xf32, #tpu.memory_space<vmem>>, vector<1x128xf32>,
    return
  }
  func.func @transform_0(%arg0: i32) -> (i32, i32) {
    %c0_i32 = arith.constant 0 : i32
    %c0_i32_0 = arith.constant 0 : i32
    %c0_i32_1 = arith.constant 0 : i32
    return %c0_i32, %c0_i32_0 : i32, i32
  }
  func.func @transform_1(%arg0: i32) -> (i32, i32) {
    %c0_i32 = arith.constant 0 : i32
    %c0_i32_0 = arith.constant 0 : i32
    %c0_i32_1 = arith.constant 0 : i32
    return %c0_i32, %c0_i32_0 : i32, i32
  }
  func.func @transform_2(%arg0: i32) -> (i32, i32) {
    %c0_i32 = arith.constant 0 : i32
    %c0_i32_0 = arith.constant 0 : i32
    return %c0_i32, %arg0 : i32, i32
  }
  func.func @transform_3(%arg0: i32) -> (i32, i32) {
    %c0_i32 = arith.constant 0 : i32
    %c0_i32_0 = arith.constant 0 : i32
    return %c0_i32, %arg0 : i32, i32
  }
}

module attributes {stable_mosaic.version = 11 : i64} {
  func.func @_smooth_kernel(%arg0: i32, %arg1: memref<16x16xbf16, #tpu.memory_space<vmem>>, %arg2: memref<128x128xbf16, #tpu.memory_space<vmem>>, %arg3: memref<16x128xf32, #tpu.memory_space<vmem>>, %arg4: memref<1x128xf32, #tpu.memory_space<vmem>>) attributes {dimension_semantics = [#tpu.dimension_semantics<parallel>], iteration_bounds = array<i64: 1>, scalar_prefetch = 0 : i64, scratch_operands = 0 : i64, tpu.core_type = #tpu.core_type<tc>, window_params = [{pipeline_mode = #tpu.pipeline_mode<synchronous>, transform_indices = @transform_0, window_bounds = array<i64: 16, 16>}, {pipeline_mode = #tpu.pipeline_mode<synchronous>, transform_indices = @transform_1, window_bounds = array<i64: 128, 128>}, {transform_indices = @transform_2, window_bounds = array<i64: 16, 128>}, {transform_indices = @transform_3, window_bounds = array<i64: 1, 128>}]} {
    %c0 = arith.constant 0 : index
    %c0_0 = arith.constant 0 : index
    %0 = vector.load %arg3[%c0, %c0_0] : memref<16x128xf32, #tpu.memory_space<vmem>>, vector<16x128xf32>
    %c0_1 = arith.constant 0 : index
    %c0_2 = arith.constant 0 : index
    %1 = vector.load %arg3[%c0_1, %c0_2] : memref<16x128xf32, #tpu.memory_space<vmem>>, vector<16x128xf32>
    %2 = arith.truncf %1 : vector<16x128xf32> to vector<16x128xbf16>
    %c0_3 = arith.constant 0 : index
    %c0_4 = arith.constant 0 : index
    %3 = vector.load %arg1[%c0_3, %c0_4] : memref<16x16xbf16, #tpu.memory_space<vmem>>, vector<16x16xbf16>
    %cst = arith.constant dense<0.000000e+00> : vector<16x128xf32>
    %4 = tpu.matmul %3, %2, %cst {dimension_numbers = #tpu.dot_dimension_numbers<[1], [0], [0], [1], [0, 0, 1, 1], [], []>} : vector<16x16xbf16>, vector<16x128xbf16>, vector<16x128xf32> -> vector<16x128xf32>
    %5 = arith.truncf %4 : vector<16x128xf32> to vector<16x128xbf16>
    %c0_5 = arith.constant 0 : index
    %c0_6 = arith.constant 0 : index
    %6 = vector.load %arg2[%c0_5, %c0_6] : memref<128x128xbf16, #tpu.memory_space<vmem>>, vector<128x128xbf16>
    %cst_7 = arith.constant dense<0.000000e+00> : vector<16x128xf32>
    %7 = tpu.matmul %5, %6, %cst_7 {dimension_numbers = #tpu.dot_dimension_numbers<[1], [0], [0], [1], [0, 0, 1, 1], [], []>} : vector<16x128xbf16>, vector<128x128xbf16>, vector<16x128xf32> -> vector<16x128xf32>
    %8 = arith.subf %0, %7 : vector<16x128xf32>
    %9 = math.absf %8 : vector<16x128xf32>
    %cst_8 = arith.constant dense<0.000000e+00> : vector<128xf32>
    %10 = vector.multi_reduction <add>, %9, %cst_8 [0] : vector<16x128xf32> to vector<128xf32>
    %11 = vector.shape_cast %10 : vector<128xf32> to vector<1x128xf32>
    %c0_9 = arith.constant 0 : index
    %c0_10 = arith.constant 0 : index
    %12 = vector.load %arg4[%c0_9, %c0_10] : memref<1x128xf32, #tpu.memory_space<vmem>>, vector<1x128xf32>
    tpu.vector_store %arg4[%c0_9, %c0_10], %11 {strides = array<i32>} : memref<1x128xf32, #tpu.memory_space<vmem>>, vector<1x128xf32>,
    return
  }
  func.func @transform_0(%arg0: i32) -> (i32, i32) {
    %c0_i32 = arith.constant 0 : i32
    %c0_i32_0 = arith.constant 0 : i32
    %c0_i32_1 = arith.constant 0 : i32
    return %c0_i32, %c0_i32_0 : i32, i32
  }
  func.func @transform_1(%arg0: i32) -> (i32, i32) {
    %c0_i32 = arith.constant 0 : i32
    %c0_i32_0 = arith.constant 0 : i32
    %c0_i32_1 = arith.constant 0 : i32
    return %c0_i32, %c0_i32_0 : i32, i32
  }
  func.func @transform_2(%arg0: i32) -> (i32, i32) {
    %c0_i32 = arith.constant 0 : i32
    %c0_i32_0 = arith.constant 0 : i32
    return %c0_i32, %arg0 : i32, i32
  }
  func.func @transform_3(%arg0: i32) -> (i32, i32) {
    %c0_i32 = arith.constant 0 : i32
    %c0_i32_0 = arith.constant 0 : i32
    return %c0_i32, %arg0 : i32, i32
  }
}

</mosaic_0001>

<bundles_post_ra>
// kernel: tpu_custom_call.1
= control target key start
LH: loop header
LB: loop body
LE: loop exit
PB: predicated region body
PF: predicated region fallthrough
CT: control target
= control target key end

     0   :  { %8 = vsyncpa [#allocation3], 0  ;;  %s440_s0 = inlined_call_operand.hbm [shape: bf16[16,16], index: 0, kind: input, shape index: {}]   ;;  %s441_s1 = inlined_call_operand.hbm [shape: bf16[128,128], index: 1, kind: input, shape index: {}]   ;;  %s442_s2 = inlined_call_operand.hbm [shape: f32[16,128], index: 2, kind: input, shape index: {}]   ;;  %s443_s3 = inlined_call_operand.hbm [shape: f32[1,128], index: 3, kind: output, shape index: {}]  }
   0x1   :  { %9 = vsyncpa [#allocation6], 0 }
   0x2   :  { %10 = vsyncpa [#allocation4], 0  ;;  %s398_s12 = smov [#allocation5]   ;;  %s399_s14 = smov [#allocation2]  }
   0x3   :  { %s28_s13 = sshll.u32 %s398_s12, 4  ;;  %s16_s15 = sshll.u32 %s399_s14, 4  ;;  %s29_s13 = int_to_ptr.vmem [resolvable:$true] %s28_s13  ;;  %s17_s15 = int_to_ptr.vmem [resolvable:$true] %s16_s15 }
   0x4   :  { %s320_s16 = scalar_lea.vmem %s29_s13, 1024  ;;  %p325_p1 = scmp.lt.s32.totalorder %s29_s13, %s29_s13 }
   0x5   :  { %p321_p0 = scmp.ne.s32.totalorder %s29_s13, %s320_s16  ;;  %p326_p2 = scmp.lt.s32.totalorder %s320_s16, %s320_s16 }
   0x7   :  { %p327_p3 = por %p326_p2, %p325_p1 }
   0x9   :  { %p328_p4 = pnand %p327_p3, %p321_p0 }
   0xb   :  { %331 = shalt.err (!%p328_p4)
}
   0xc   :  { %s400_s17 = smov 64   ;;  %s401_s18 = smov 4  }
   0xd   :  { %34 = dma.hbm_to_vmem [thread:$0]  %s441_s1, 1024, %s29_s13, [#allocation6], %s400_s17, %s400_s17, %s401_s18  }
   0xe   :  { %s340_s21 = scalar_lea.vmem %s17_s15, 128  ;;  %p345_p6 = scmp.lt.s32.totalorder %s17_s15, %s17_s15 }
   0xf   :  { %p341_p5 = scmp.ne.s32.totalorder %s17_s15, %s340_s21  ;;  %p346_p7 = scmp.lt.s32.totalorder %s340_s21, %s340_s21 }
  0x11   :  { %p347_p8 = por %p346_p7, %p345_p6 }
  0x13   :  { %p348_p9 = pnand %p347_p8, %p341_p5 }
  0x15   :  { %351 = shalt.err (!%p348_p9)
}
  0x16   :  { %22 = dma.hbm_to_vmem [thread:$0]  %s440_s0, 128, %s17_s15, [#allocation3], %s400_s17, %s400_s17, %s401_s18  }
  0x17   :  { %s402_s24 = smov [#allocation7]  }
  0x18   :  { %s40_s25 = sshll.u32 %s402_s24, 4  ;;  %s41_s25 = int_to_ptr.vmem [resolvable:$true] %s40_s25 }
  0x19   :  { %s360_s26 = scalar_lea.vmem %s41_s25, 256  ;;  %p365_p11 = scmp.lt.s32.totalorder %s41_s25, %s41_s25 }
  0x1a   :  { %p361_p10 = scmp.ne.s32.totalorder %s41_s25, %s360_s26  ;;  %p366_p12 = scmp.lt.s32.totalorder %s360_s26, %s360_s26 }
  0x1c   :  { %p367_p13 = por %p366_p12, %p365_p11 }
  0x1e   :  { %p368_p0 = pnand %p367_p13, %p361_p10 }
  0x20   :  { %371 = shalt.err (!%p368_p0)
}
  0x21   :  { %s403_s1 = smov 128   ;;  %s404_s27 = smov 8  }
  0x22   :  { %46 = dma.hbm_to_vmem [thread:$0]  %s442_s2, 256, %s41_s25, [#allocation6], %s403_s1, %s403_s1, %s404_s27  }
  0x23   :  { %392 = dma.done.wait [#allocation3], 128  }
  0x24   :  { %393 = vsyncadd [#allocation3], 4294967168 }
  0x25   :  { %394 = dma.done.wait [#allocation6], 1280  }
  0x26   :  { %395 = vsyncadd [#allocation6], 4294966016  ;;  %v405_v0 = vmov 0.0   ;;  %vm406_vm0 = vmmov 0   ;;  %v57_v1 = vld [vmem:[#allocation7] sm:$0xff]  ;;  %v58_v2 = vld [vmem:[#allocation7 + $0x8] sm:$0xff] }
  0x27   :  { %267 = vmatprep.subr.bf16.mxu0 %v405_v0  ;;  %269 = vmatprep.mubr.msk.bf16.mxu0 %vm406_vm0, %v405_v0  ;;  %v59_v3 = vpack.c.bf16 %v58_v2, %v57_v1  ;;  %v303_v4 = vld [vmem:[#allocation2] sm:$0xff]   ;;  %vm67_vm1 = vcmask 130048   ;;  %v305_v6 = vld [vmem:[#allocation5 + $0x30] sm:$0xff]   ;;  %v306_v7 = vld [vmem:[#allocation5 + $0x28] sm:$0xff]   ;;  %s407_s0 = smov [#allocation8]  }
  0x28   :  { %273 = vmatprep.subr.bf16.mxu1 %v405_v0  ;;  %289 = vmatprep.mubr.msk.bf16.mxu1 %vm406_vm0, %v405_v0  ;;  %v304_v5 = vld [vmem:[#allocation5 + $0x38] sm:$0xff]   ;;  %v307_v8 = vld [vmem:[#allocation5 + $0x20] sm:$0xff]   ;;  %v309_v10 = vld [vmem:[#allocation5 + $0x10] sm:$0xff]   ;;  %s236_s2 = sshll.u32 %s407_s0, 4  ;;  %s237_s2 = int_to_ptr.vmem [resolvable:$true] %s236_s2 }
  0x29   :  { %268 = vmatpush3.bf16.msra.mxu0 %v59_v3  ;;  %274 = vmatpush3.bf16.msra.mxu1 %v304_v5  ;;  %v308_v9 = vld [vmem:[#allocation5 + $0x18] sm:$0xff]   ;;  %v310_v11 = vld [vmem:[#allocation5 + $0x8] sm:$0xff]   ;;  %v311_v12 = vld [vmem:[#allocation5] sm:$0xff]   ;;  %s372_s30 = scalar_lea.vmem %s237_s2, 16  ;;  %s376_s4 = scalar_lea.vmem %s237_s2, 32 }
  0x2a   :  { %275 = vmatprep.subr.bf16.mxu1 %v405_v0  ;;  %p373_p1 = scmp.ne.s32.totalorder %s237_s2, %s372_s30  ;;  %p377_p2 = scmp.lt.s32.totalorder %s237_s2, %s237_s2 }
  0x2b   :  { %p378_p3 = scmp.lt.s32.totalorder %s376_s4, %s372_s30 }
  0x2c   :  { %270 = vmatmul.mubr.msk.bf16.vlgmr.msra.gmra.mxu0 %vm67_vm1, %v303_v4 }
  0x2d   :  { %276 = vmatpush3.bf16.msra.mxu1 %v305_v6  ;;  %p379_p4 = por %p378_p3, %p377_p2 }
  0x2e   :  { %277 = vmatprep.subr.bf16.mxu1 %v405_v0 }
  0x2f   :  { %p380_p5 = pnand %p379_p4, %p373_p1 }
  0x31   :  { %278 = vmatpush3.bf16.msra.mxu1 %v306_v7 }
  0x32   :  { %279 = vmatprep.subr.bf16.mxu1 %v405_v0 }
  0x35   :  { %280 = vmatpush3.bf16.msra.mxu1 %v307_v8 }
  0x36   :  { %281 = vmatprep.subr.bf16.mxu1 %v405_v0 }
  0x39   :  { %282 = vmatpush3.bf16.msra.mxu1 %v308_v9 }
  0x3a   :  { %283 = vmatprep.subr.bf16.mxu1 %v405_v0 }
  0x3d   :  { %284 = vmatpush3.bf16.msra.mxu1 %v309_v10 }
  0x3e   :  { %285 = vmatprep.subr.bf16.mxu1 %v405_v0 }
  0x41   :  { %286 = vmatpush3.bf16.msra.mxu1 %v310_v11 }
  0x42   :  { %287 = vmatprep.subr.bf16.mxu1 %v405_v0 }
  0x45   :  { %288 = vmatpush3.bf16.msra.mxu1 %v311_v12 }
  0xec   :  { %v105_v13 = vpop.f32.mrf.mxu0 }
  0xee   :  { %v271_v14 = vpop.f32.mrf.mxu0 }
  0xf0   :  { %v108_v15 = vpop.f32.mrf.mxu0 }
  0xf1   :  { %v112_v16 = vpack.c.bf16 %v108_v15, %v105_v13 }
  0xf2   :  { %v272_v17 = vpop.f32.mrf.mxu0 }
  0xf3   :  { %290 = vmatmul.mubr.bf16.vlgmr.msra.gmra.mxu1 %v112_v16 }
 0x1b3   :  { %v211_v18 = vpop.f32.mrf.mxu1 }
 0x1b4   :  { %v218_v20 = vsub.f32 %v57_v1, %v211_v18 }
 0x1b5   :  { %v291_v19 = vpop.f32.mrf.mxu1 }
 0x1b6   :  { %v220_v24 = vand.u32 2147483647, %v218_v20 }
 0x1b7   :  { %v214_v21 = vpop.f32.mrf.mxu1 }
 0x1b8   :  { %v219_v22 = vsub.f32 %v58_v2, %v214_v21 }
 0x1b9   :  { %v292_v23 = vpop.f32.mrf.mxu1 }
 0x1ba   :  { %v221_v25 = vand.u32 2147483647, %v219_v22 }
 0x1bc   :  { %v222_v26 = vadd.f32 %v221_v25, %v220_v24 }
 0x1be   :  { %v223_v27 = vrot.slane %v222_v26, 4 }
 0x1c0   :  { %v224_v28 = vadd.f32 %v223_v27, %v222_v26 }
 0x1c2   :  { %v225_v29 = vrot.slane %v224_v28, 2 }
 0x1c4   :  { %v226_v30 = vadd.f32 %v225_v29, %v224_v28 }
 0x1c6   :  { %v227_v31 = vrot.slane %v226_v30, 1 }
 0x1c8   :  { %v228_v32 = vadd.f32 %v227_v31, %v226_v30 }
 0x1ca   :  { %229 = vst [vmem:[#allocation8] sm:$0x1] %v228_v32 }
 0x1cb   :  { %383 = shalt.err (!%p380_p5)
}
 0x1cc   :  { %239 = dma.vmem_to_hbm [thread:$0]  %s237_s2, 16, %s443_s3, [#allocation4]  }
 0x1cd   :  { %396 = dma.done.wait [#allocation4], 16  }
 0x1ce   :  { %397 = vsyncadd [#allocation4], 4294967280 }
 0x1cf   :  { %243 = vsyncpa [#allocation3], 1 }
 0x1d0   :  { %244 = vsyncpa [#allocation6], 1 }
 0x1d1   :  { %245 = vsyncpa [#allocation4], 1 }

// kernel: tpu_custom_call.1
= control target key start
LH: loop header
LB: loop body
LE: loop exit
PB: predicated region body
PF: predicated region fallthrough
CT: control target
= control target key end

     0   :  { %8 = vsyncpa [#allocation3], 0  ;;  %s440_s0 = inlined_call_operand.hbm [shape: bf16[16,16], index: 0, kind: input, shape index: {}]   ;;  %s441_s1 = inlined_call_operand.hbm [shape: bf16[128,128], index: 1, kind: input, shape index: {}]   ;;  %s442_s2 = inlined_call_operand.hbm [shape: f32[16,128], index: 2, kind: input, shape index: {}]   ;;  %s443_s3 = inlined_call_operand.hbm [shape: f32[1,128], index: 3, kind: output, shape index: {}]  }
   0x1   :  { %9 = vsyncpa [#allocation6], 0 }
   0x2   :  { %10 = vsyncpa [#allocation4], 0  ;;  %s398_s12 = smov [#allocation5]   ;;  %s399_s14 = smov [#allocation2]  }
   0x3   :  { %s28_s13 = sshll.u32 %s398_s12, 4  ;;  %s16_s15 = sshll.u32 %s399_s14, 4  ;;  %s29_s13 = int_to_ptr.vmem [resolvable:$true] %s28_s13  ;;  %s17_s15 = int_to_ptr.vmem [resolvable:$true] %s16_s15 }
   0x4   :  { %s320_s16 = scalar_lea.vmem %s29_s13, 1024  ;;  %p325_p1 = scmp.lt.s32.totalorder %s29_s13, %s29_s13 }
   0x5   :  { %p321_p0 = scmp.ne.s32.totalorder %s29_s13, %s320_s16  ;;  %p326_p2 = scmp.lt.s32.totalorder %s320_s16, %s320_s16 }
   0x7   :  { %p327_p3 = por %p326_p2, %p325_p1 }
   0x9   :  { %p328_p4 = pnand %p327_p3, %p321_p0 }
   0xb   :  { %331 = shalt.err (!%p328_p4)
}
   0xc   :  { %s400_s17 = smov 64   ;;  %s401_s18 = smov 4  }
   0xd   :  { %34 = dma.hbm_to_vmem [thread:$0]  %s441_s1, 1024, %s29_s13, [#allocation6], %s400_s17, %s400_s17, %s401_s18  }
   0xe   :  { %s340_s21 = scalar_lea.vmem %s17_s15, 128  ;;  %p345_p6 = scmp.lt.s32.totalorder %s17_s15, %s17_s15 }
   0xf   :  { %p341_p5 = scmp.ne.s32.totalorder %s17_s15, %s340_s21  ;;  %p346_p7 = scmp.lt.s32.totalorder %s340_s21, %s340_s21 }
  0x11   :  { %p347_p8 = por %p346_p7, %p345_p6 }
  0x13   :  { %p348_p9 = pnand %p347_p8, %p341_p5 }
  0x15   :  { %351 = shalt.err (!%p348_p9)
}
  0x16   :  { %22 = dma.hbm_to_vmem [thread:$0]  %s440_s0, 128, %s17_s15, [#allocation3], %s400_s17, %s400_s17, %s401_s18  }
  0x17   :  { %s402_s24 = smov [#allocation7]  }
  0x18   :  { %s40_s25 = sshll.u32 %s402_s24, 4  ;;  %s41_s25 = int_to_ptr.vmem [resolvable:$true] %s40_s25 }
  0x19   :  { %s360_s26 = scalar_lea.vmem %s41_s25, 256  ;;  %p365_p11 = scmp.lt.s32.totalorder %s41_s25, %s41_s25 }
  0x1a   :  { %p361_p10 = scmp.ne.s32.totalorder %s41_s25, %s360_s26  ;;  %p366_p12 = scmp.lt.s32.totalorder %s360_s26, %s360_s26 }
  0x1c   :  { %p367_p13 = por %p366_p12, %p365_p11 }
  0x1e   :  { %p368_p0 = pnand %p367_p13, %p361_p10 }
  0x20   :  { %371 = shalt.err (!%p368_p0)
}
  0x21   :  { %s403_s1 = smov 128   ;;  %s404_s27 = smov 8  }
  0x22   :  { %46 = dma.hbm_to_vmem [thread:$0]  %s442_s2, 256, %s41_s25, [#allocation6], %s403_s1, %s403_s1, %s404_s27  }
  0x23   :  { %392 = dma.done.wait [#allocation3], 128  }
  0x24   :  { %393 = vsyncadd [#allocation3], 4294967168 }
  0x25   :  { %394 = dma.done.wait [#allocation6], 1280  }
  0x26   :  { %395 = vsyncadd [#allocation6], 4294966016  ;;  %v405_v0 = vmov 0.0   ;;  %vm406_vm0 = vmmov 0   ;;  %v57_v1 = vld [vmem:[#allocation7] sm:$0xff]  ;;  %v58_v2 = vld [vmem:[#allocation7 + $0x8] sm:$0xff] }
  0x27   :  { %267 = vmatprep.subr.bf16.mxu0 %v405_v0  ;;  %269 = vmatprep.mubr.msk.bf16.mxu0 %vm406_vm0, %v405_v0  ;;  %v59_v3 = vpack.c.bf16 %v58_v2, %v57_v1  ;;  %v303_v4 = vld [vmem:[#allocation2] sm:$0xff]   ;;  %vm67_vm1 = vcmask 130048   ;;  %v305_v6 = vld [vmem:[#allocation5 + $0x30] sm:$0xff]   ;;  %v306_v7 = vld [vmem:[#allocation5 + $0x28] sm:$0xff]   ;;  %s407_s0 = smov [#allocation8]  }
  0x28   :  { %273 = vmatprep.subr.bf16.mxu1 %v405_v0  ;;  %289 = vmatprep.mubr.msk.bf16.mxu1 %vm406_vm0, %v405_v0  ;;  %v304_v5 = vld [vmem:[#allocation5 + $0x38] sm:$0xff]   ;;  %v307_v8 = vld [vmem:[#allocation5 + $0x20] sm:$0xff]   ;;  %v309_v10 = vld [vmem:[#allocation5 + $0x10] sm:$0xff]   ;;  %s236_s2 = sshll.u32 %s407_s0, 4  ;;  %s237_s2 = int_to_ptr.vmem [resolvable:$true] %s236_s2 }
  0x29   :  { %268 = vmatpush3.bf16.msra.mxu0 %v59_v3  ;;  %274 = vmatpush3.bf16.msra.mxu1 %v304_v5  ;;  %v308_v9 = vld [vmem:[#allocation5 + $0x18] sm:$0xff]   ;;  %v310_v11 = vld [vmem:[#allocation5 + $0x8] sm:$0xff]   ;;  %v311_v12 = vld [vmem:[#allocation5] sm:$0xff]   ;;  %s372_s30 = scalar_lea.vmem %s237_s2, 16  ;;  %s376_s4 = scalar_lea.vmem %s237_s2, 32 }
  0x2a   :  { %275 = vmatprep.subr.bf16.mxu1 %v405_v0  ;;  %p373_p1 = scmp.ne.s32.totalorder %s237_s2, %s372_s30  ;;  %p377_p2 = scmp.lt.s32.totalorder %s237_s2, %s237_s2 }
  0x2b   :  { %p378_p3 = scmp.lt.s32.totalorder %s376_s4, %s372_s30 }
  0x2c   :  { %270 = vmatmul.mubr.msk.bf16.vlgmr.msra.gmra.mxu0 %vm67_vm1, %v303_v4 }
  0x2d   :  { %276 = vmatpush3.bf16.msra.mxu1 %v305_v6  ;;  %p379_p4 = por %p378_p3, %p377_p2 }
  0x2e   :  { %277 = vmatprep.subr.bf16.mxu1 %v405_v0 }
  0x2f   :  { %p380_p5 = pnand %p379_p4, %p373_p1 }
  0x31   :  { %278 = vmatpush3.bf16.msra.mxu1 %v306_v7 }
  0x32   :  { %279 = vmatprep.subr.bf16.mxu1 %v405_v0 }
  0x35   :  { %280 = vmatpush3.bf16.msra.mxu1 %v307_v8 }
  0x36   :  { %281 = vmatprep.subr.bf16.mxu1 %v405_v0 }
  0x39   :  { %282 = vmatpush3.bf16.msra.mxu1 %v308_v9 }
  0x3a   :  { %283 = vmatprep.subr.bf16.mxu1 %v405_v0 }
  0x3d   :  { %284 = vmatpush3.bf16.msra.mxu1 %v309_v10 }
  0x3e   :  { %285 = vmatprep.subr.bf16.mxu1 %v405_v0 }
  0x41   :  { %286 = vmatpush3.bf16.msra.mxu1 %v310_v11 }
  0x42   :  { %287 = vmatprep.subr.bf16.mxu1 %v405_v0 }
  0x45   :  { %288 = vmatpush3.bf16.msra.mxu1 %v311_v12 }
  0xec   :  { %v105_v13 = vpop.f32.mrf.mxu0 }
  0xee   :  { %v271_v14 = vpop.f32.mrf.mxu0 }
  0xf0   :  { %v108_v15 = vpop.f32.mrf.mxu0 }
  0xf1   :  { %v112_v16 = vpack.c.bf16 %v108_v15, %v105_v13 }
  0xf2   :  { %v272_v17 = vpop.f32.mrf.mxu0 }
  0xf3   :  { %290 = vmatmul.mubr.bf16.vlgmr.msra.gmra.mxu1 %v112_v16 }
 0x1b3   :  { %v211_v18 = vpop.f32.mrf.mxu1 }
 0x1b4   :  { %v218_v20 = vsub.f32 %v57_v1, %v211_v18 }
 0x1b5   :  { %v291_v19 = vpop.f32.mrf.mxu1 }
 0x1b6   :  { %v220_v24 = vand.u32 2147483647, %v218_v20 }
 0x1b7   :  { %v214_v21 = vpop.f32.mrf.mxu1 }
 0x1b8   :  { %v219_v22 = vsub.f32 %v58_v2, %v214_v21 }
 0x1b9   :  { %v292_v23 = vpop.f32.mrf.mxu1 }
 0x1ba   :  { %v221_v25 = vand.u32 2147483647, %v219_v22 }
 0x1bc   :  { %v222_v26 = vadd.f32 %v221_v25, %v220_v24 }
 0x1be   :  { %v223_v27 = vrot.slane %v222_v26, 4 }
 0x1c0   :  { %v224_v28 = vadd.f32 %v223_v27, %v222_v26 }
 0x1c2   :  { %v225_v29 = vrot.slane %v224_v28, 2 }
 0x1c4   :  { %v226_v30 = vadd.f32 %v225_v29, %v224_v28 }
 0x1c6   :  { %v227_v31 = vrot.slane %v226_v30, 1 }
 0x1c8   :  { %v228_v32 = vadd.f32 %v227_v31, %v226_v30 }
 0x1ca   :  { %229 = vst [vmem:[#allocation8] sm:$0x1] %v228_v32 }
 0x1cb   :  { %383 = shalt.err (!%p380_p5)
}
 0x1cc   :  { %239 = dma.vmem_to_hbm [thread:$0]  %s237_s2, 16, %s443_s3, [#allocation4]  }
 0x1cd   :  { %396 = dma.done.wait [#allocation4], 16  }
 0x1ce   :  { %397 = vsyncadd [#allocation4], 4294967280 }
 0x1cf   :  { %243 = vsyncpa [#allocation3], 1 }
 0x1d0   :  { %244 = vsyncpa [#allocation6], 1 }
 0x1d1   :  { %245 = vsyncpa [#allocation4], 1 }

</bundles_post_ra>
